<compile_context>
chip_gen: v7x
topology: tpu7x:2x2x1
jax: 0.10.0
libtpu: 0.0.40
codegen_flags: <defaults>
</compile_context>

<pallas_src>
import jax
import jax.numpy as jnp
from jax.experimental import pallas as pl
from jax.experimental.pallas import tpu as pltpu


def _bspline_kernel(x_ref, o_ref):
    x = x_ref[...]
    # Exact branch chain (NaN -> 0, like the PyTorch if/elif falling through).
    y = jnp.where(
        x < -1.0, 0.0,
        jnp.where(x < 0.0, x + 1.0,
                  jnp.where(x < 1.0, 1.0 - x, 0.0)))
    o_ref[...] = y.astype(o_ref.dtype)


def _round_up(v, m):
    return ((v + m - 1) // m) * m


def bspline_activation(x,
                       *,
                       target_tile_bytes=8 * 1024 * 1024,
                       vmem_limit_bytes=48 * 1024 * 1024,
                       min_grid_blocks=4,
                       donate_input=False):
    """Elementwise hat-function activation via Pallas (HBM-roofline bound)."""
    orig_shape = x.shape
    orig_dtype = x.dtype
    n = x.size
    if n == 0:
        return x

    itemsize = jnp.dtype(orig_dtype).itemsize
    flat = x.reshape(-1)

    compiler_params = pltpu.CompilerParams(
        dimension_semantics=(pltpu.PARALLEL,),
        vmem_limit_bytes=vmem_limit_bytes,
    )
    cost = pl.CostEstimate(
        flops=5 * n, transcendentals=0, bytes_accessed=2 * n * itemsize)
    io_alias = {0: 0} if donate_input else {}

    if n % 128 == 0:
        # Common path: lane-dense (rows, width) slab; width | n, width % 128 == 0.
        width = 128
        for cand in range(2048, 0, -128):
            if n % cand == 0:
                width = cand
                break
        rows = n // width
        x2 = flat.reshape(rows, width)

        # Rows per tile: ~target_tile_bytes per buffer, multiple of 8 sublanes,
        # but keep at least `min_grid_blocks` grid steps for DMA pipelining and
        # dual-TC use on v7x.
        max_rows = max(8, (target_tile_bytes // (width * itemsize)) // 8 * 8)
        desired = _round_up(pl.cdiv(rows, min_grid_blocks), 8)
        block_rows = min(max_rows, desired)
        if block_rows >= rows:
            block_rows = rows  # tiny tensor: single full-extent block (legal)
        grid = (pl.cdiv(rows, block_rows),)  # ragged last block masked by Pallas

        out = pl.pallas_call(
            _bspline_kernel,
            out_shape=jax.ShapeDtypeStruct((rows, width), orig_dtype),
            grid_spec=pltpu.PrefetchScalarGridSpec(
                num_scalar_prefetch=0,
                grid=grid,
                in_specs=[pl.BlockSpec((block_rows, width), lambda i: (i, 0))],
                out_specs=pl.BlockSpec((block_rows, width), lambda i: (i, 0)),
            ),
            compiler_params=compiler_params,
            cost_estimate=cost,
            input_output_aliases=io_alias,
        )(x2)
        return out.reshape(orig_shape)

    # Ragged path (n % 128 != 0): run directly on the 1-D flat array, no pad,
    # no final slice.  Blocks are multiples of 1024 (= 8 sublanes x 128 lanes);
    # the partial tail block is masked by Pallas.
    max_elems = max(1024, (target_tile_bytes // itemsize) // 1024 * 1024)
    desired = _round_up(pl.cdiv(n, min_grid_blocks), 1024)
    block_elems = min(max_elems, desired)
    if block_elems >= n:
        block_elems = n  # small tensor: single full-extent block (always legal)
    grid = (pl.cdiv(n, block_elems),)

    out = pl.pallas_call(
        _bspline_kernel,
        out_shape=jax.ShapeDtypeStruct((n,), orig_dtype),
        grid_spec=pltpu.PrefetchScalarGridSpec(
            num_scalar_prefetch=0,
            grid=grid,
            in_specs=[pl.BlockSpec((block_elems,), lambda i: (i,))],
            out_specs=pl.BlockSpec((block_elems,), lambda i: (i,)),
        ),
        compiler_params=compiler_params,
        cost_estimate=cost,
        input_output_aliases=io_alias,
    )(flat)
    return out.reshape(orig_shape)


def _reference(x):
    # Pure-JAX reference of the PyTorch branch logic, applied elementwise.
    return jnp.where(
        x < -1.0, 0.0,
        jnp.where(x < 0.0, x + 1.0,
                  jnp.where(x < 1.0, 1.0 - x, 0.0))).astype(x.dtype)


if __name__ == "__main__":
    key = jax.random.PRNGKey(0)

    # Typical NCHW activation input (exercises the lane-dense 2-D path).
    x = jax.random.normal(key, (2, 4, 16, 16), dtype=jnp.float32) * 2.0
    y = jax.block_until_ready(bspline_activation(x))
    y_ref = _reference(x)
    assert y.shape == x.shape and y.dtype == x.dtype
    assert jnp.max(jnp.abs(y - y_ref)) < 1e-6

    # Ragged size (exercises the pad-free 1-D path).
    x2 = jax.random.normal(jax.random.PRNGKey(1), (3, 5, 7), dtype=jnp.float32) * 2.0
    y2 = jax.block_until_ready(bspline_activation(x2))
    assert y2.shape == x2.shape and y2.dtype == x2.dtype
    assert jnp.max(jnp.abs(y2 - _reference(x2))) < 1e-6

    print("KERNEL_OK")
</pallas_src>

<mosaic_0001>
module attributes {stable_mosaic.version = 11 : i64} {
  func.func @_bspline_kernel(%arg0: i32, %arg1: memref<1x2048xf32, #tpu.memory_space<vmem>>, %arg2: memref<1x2048xf32, #tpu.memory_space<vmem>>) attributes {dimension_semantics = [#tpu.dimension_semantics<parallel>], iteration_bounds = array<i64: 1>, scalar_prefetch = 0 : i64, scratch_operands = 0 : i64, tpu.core_type = #tpu.core_type<tc>, window_params = [{transform_indices = @transform_0, window_bounds = array<i64: 1, 2048>}, {transform_indices = @transform_1, window_bounds = array<i64: 1, 2048>}]} {
    %c0 = arith.constant 0 : index
    %c0_0 = arith.constant 0 : index
    %0 = vector.load %arg1[%c0, %c0_0] : memref<1x2048xf32, #tpu.memory_space<vmem>>, vector<1x2048xf32>
    %cst = arith.constant -1.000000e+00 : f32
    %1 = vector.broadcast %cst : f32 to vector<1x2048xf32>
    %2 = arith.cmpf olt, %0, %1 : vector<1x2048xf32>
    %cst_1 = arith.constant 0.000000e+00 : f32
    %3 = vector.broadcast %cst_1 : f32 to vector<1x2048xf32>
    %4 = arith.cmpf olt, %0, %3 : vector<1x2048xf32>
    %cst_2 = arith.constant 1.000000e+00 : f32
    %5 = vector.broadcast %cst_2 : f32 to vector<1x2048xf32>
    %6 = arith.addf %0, %5 : vector<1x2048xf32>
    %cst_3 = arith.constant 1.000000e+00 : f32
    %7 = vector.broadcast %cst_3 : f32 to vector<1x2048xf32>
    %8 = arith.cmpf olt, %0, %7 : vector<1x2048xf32>
    %cst_4 = arith.constant 1.000000e+00 : f32
    %9 = vector.broadcast %cst_4 : f32 to vector<1x2048xf32>
    %10 = arith.subf %9, %0 : vector<1x2048xf32>
    %cst_5 = arith.constant 0.000000e+00 : f32
    %11 = vector.broadcast %cst_5 : f32 to vector<1x2048xf32>
    %12 = arith.select %8, %10, %11 : vector<1x2048xi1>, vector<1x2048xf32>
    %13 = arith.select %4, %6, %12 : vector<1x2048xi1>, vector<1x2048xf32>
    %cst_6 = arith.constant 0.000000e+00 : f32
    %14 = vector.broadcast %cst_6 : f32 to vector<1x2048xf32>
    %15 = arith.select %2, %14, %13 : vector<1x2048xi1>, vector<1x2048xf32>
    %c0_7 = arith.constant 0 : index
    %c0_8 = arith.constant 0 : index
    %16 = vector.load %arg2[%c0_7, %c0_8] : memref<1x2048xf32, #tpu.memory_space<vmem>>, vector<1x2048xf32>
    tpu.vector_store %arg2[%c0_7, %c0_8], %15 {strides = array<i32>} : memref<1x2048xf32, #tpu.memory_space<vmem>>, vector<1x2048xf32>,
    return
  }
  func.func @transform_0(%arg0: i32) -> (i32, i32) {
    %c0_i32 = arith.constant 0 : i32
    %c0_i32_0 = arith.constant 0 : i32
    return %arg0, %c0_i32 : i32, i32
  }
  func.func @transform_1(%arg0: i32) -> (i32, i32) {
    %c0_i32 = arith.constant 0 : i32
    %c0_i32_0 = arith.constant 0 : i32
    return %arg0, %c0_i32 : i32, i32
  }
}

</mosaic_0001>

<bundles_post_ra>
// kernel: tpu_custom_call.1
= control target key start
LH: loop header
LB: loop body
LE: loop exit
PB: predicated region body
PF: predicated region fallthrough
CT: control target
= control target key end

     0   :  { %6 = vsyncpa [#allocation3], 0  ;;  %s142_s0 = inlined_call_operand.hbm [shape: f32[1,2048], index: 0, kind: input, shape index: {}]   ;;  %s143_s1 = inlined_call_operand.hbm [shape: f32[1,2048], index: 1, kind: output, shape index: {}]  }
   0x1   :  { %7 = vsyncpa [#allocation4], 0  ;;  %s106_s6 = smov [#allocation2]   ;;  %s58_s10 = scalar_lea.hbm %s142_s0, 256 }
   0x2   :  { %s14_s7 = sshll.u32 %s106_s6, 4  ;;  %p59_p0 = scmp.ne.s32.totalorder %s142_s0, %s58_s10  ;;  %s15_s7 = int_to_ptr.vmem [resolvable:$true] %s14_s7 }
   0x3   :  { %p62_p1 = scmp.lt.u32.totalorder %s58_s10, %s142_s0 }
   0x5   :  { %p64_p2 = pnand %p62_p1, %p59_p0 }
   0x7   :  { %67 = shalt.err (!%p64_p2)
}
   0x8   :  { %s68_s15 = scalar_lea.vmem %s15_s7, 256  ;;  %p73_p4 = scmp.lt.s32.totalorder %s15_s7, %s15_s7 }
   0x9   :  { %p69_p3 = scmp.ne.s32.totalorder %s15_s7, %s68_s15  ;;  %p74_p5 = scmp.lt.s32.totalorder %s68_s15, %s68_s15 }
   0xb   :  { %p75_p6 = por %p74_p5, %p73_p4 }
   0xd   :  { %p76_p7 = pnand %p75_p6, %p69_p3 }
   0xf   :  { %79 = shalt.err (!%p76_p7)
}
  0x10   :  { %17 = dma.hbm_to_vmem [thread:$0]  %s142_s0, 256, %s15_s7, [#allocation3]  }
  0x11   :  { %102 = dma.done.wait [#allocation3], 256  }
  0x12   :  { %103 = vsyncadd [#allocation3], 4294967040  ;;  %v21_v0 = vld [vmem:[#allocation2] sm:$0xff]  ;;  %v22_v1 = vld [vmem:[#allocation2 + $0x8] sm:$0xff]  ;;  %s107_s18 = smov [#allocation5]  }
  0x13   :  { %v27_v2 = vadd.f32 1.0, %v21_v0  ;;  %vm29_vm0 = vcmp.lt.f32.partialorder %v21_v0, 1.0  ;;  %vm25_vm1 = vcmp.lt.f32.partialorder %v21_v0, 0.0  ;;  %v31_v3 = vsub.f32 1.0, %v21_v0  ;;  %s47_s19 = sshll.u32 %s107_s18, 4  ;;  %s48_s19 = int_to_ptr.vmem [resolvable:$true] %s47_s19 }
  0x14   :  { %v28_v4 = vadd.f32 1.0, %v22_v1  ;;  %vm23_vm2 = vcmp.lt.f32.partialorder %v21_v0, -1.0  ;;  %vm26_vm3 = vcmp.lt.f32.partialorder %v22_v1, 0.0  ;;  %vm30_vm4 = vcmp.lt.f32.partialorder %v22_v1, 1.0  ;;  %s80_s0 = scalar_lea.vmem %s48_s19, 256  ;;  %p85_p9 = scmp.lt.s32.totalorder %s48_s19, %s48_s19 }
  0x15   :  { %v32_v5 = vsub.f32 1.0, %v22_v1  ;;  %v33_v6 = vsel %vm29_vm0, %v31_v3, 0.0  ;;  %vm24_vm5 = vcmp.lt.f32.partialorder %v22_v1, -1.0  ;;  %p81_p8 = scmp.ne.s32.totalorder %s48_s19, %s80_s0  ;;  %p86_p10 = scmp.lt.s32.totalorder %s80_s0, %s80_s0 }
  0x16   :  { %v35_v7 = vsel %vm25_vm1, %v27_v2, %v33_v6 }
  0x17   :  { %v34_v8 = vsel %vm30_vm4, %v32_v5, 0.0  ;;  %v37_v9 = vsel %vm23_vm2, 0.0, %v35_v7  ;;  %p87_p11 = por %p86_p10, %p85_p9 }
  0x18   :  { %v36_v10 = vsel %vm26_vm3, %v28_v4, %v34_v8  ;;  %39 = vst [vmem:[#allocation5] sm:$0xff] %v37_v9 }
  0x19   :  { %v38_v11 = vsel %vm24_vm5, 0.0, %v36_v10  ;;  %p88_p12 = pnand %p87_p11, %p81_p8 }
  0x1a   :  { %40 = vst [vmem:[#allocation5 + $0x8] sm:$0xff] %v38_v11 }
  0x1b   :  { %91 = shalt.err (!%p88_p12)
}
  0x1c   :  { %s92_s22 = scalar_lea.hbm %s143_s1, 256 }
  0x1d   :  { %p93_p13 = scmp.ne.s32.totalorder %s143_s1, %s92_s22  ;;  %p96_p0 = scmp.lt.u32.totalorder %s92_s22, %s143_s1 }
  0x1f   :  { %p98_p1 = pnand %p96_p0, %p93_p13 }
  0x21   :  { %101 = shalt.err (!%p98_p1)
}
  0x22   :  { %50 = dma.vmem_to_hbm [thread:$0]  %s48_s19, 256, %s143_s1, [#allocation4]  }
  0x23   :  { %104 = dma.done.wait [#allocation4], 256  }
  0x24   :  { %105 = vsyncadd [#allocation4], 4294967040 }
  0x25   :  { %54 = vsyncpa [#allocation3], 1 }
  0x26   :  { %55 = vsyncpa [#allocation4], 1 }

</bundles_post_ra>
